<compile_context>
chip_gen: v7x
topology: tpu7x:2x2x1
jax: 0.10.0
libtpu: 0.0.40
codegen_flags: <defaults>
</compile_context>

<pallas_src>
import jax
import jax.numpy as jnp
from jax.experimental import pallas as pl
from jax.experimental.pallas import tpu as pltpu

IN_FEATURES = 784
NUM_CLASSES = 10
PAD_CLASSES = 128          # lane-dense logits / output store
DIMS = [IN_FEATURES, 256, 128, 64, NUM_CLASSES]
NEG_BIG = -1.0e30          # bias for padded logit columns (inert in log_softmax)


def mlp_kernel(x_ref, w1_ref, b1_ref, w2_ref, b2_ref, w3_ref, b3_ref,
               w4_ref, b4_ref, o_ref):
    # In-kernel bf16 cast for the MXU; f32 accumulation everywhere.
    x = x_ref[...].astype(jnp.bfloat16)                                   # (TB, 784)
    h = jnp.dot(x, w1_ref[...], preferred_element_type=jnp.float32)
    h = jnp.maximum(h + b1_ref[...], 0.0)                                 # (TB, 256)
    h = jnp.dot(h.astype(jnp.bfloat16), w2_ref[...],
                preferred_element_type=jnp.float32)
    h = jnp.maximum(h + b2_ref[...], 0.0)                                 # (TB, 128)
    h = jnp.dot(h.astype(jnp.bfloat16), w3_ref[...],
                preferred_element_type=jnp.float32)
    h = jnp.maximum(h + b3_ref[...], 0.0)                                 # (TB, 64)
    # fc4 padded to 128 output columns: cols 10..127 have zero weights and ~-1e30 bias,
    # so they never win the row max and contribute exp(.) == 0 to the softmax sum.
    logits = jnp.dot(h.astype(jnp.bfloat16), w4_ref[...],
                     preferred_element_type=jnp.float32) + b4_ref[...]    # (TB, 128)
    # Numerically stable log_softmax (f32).
    m = jnp.max(logits, axis=1, keepdims=True)
    shifted = logits - m
    lse = jnp.log(jnp.sum(jnp.exp(shifted), axis=1, keepdims=True))
    o_ref[...] = (shifted - lse).astype(o_ref.dtype)


def _round_up(n, m):
    return ((n + m - 1) // m) * m


def prepare_params(params):
    """Cast weights to bf16 (biases stay f32, shape [1, out]). fc4 is padded from 10 to
    128 output columns with zero weights and a ~-1e30 bias so padded logit columns are
    inert in log_softmax and the output store is lane-dense."""
    prepared = []
    for i, (w, b) in enumerate(params):
        w = w.astype(jnp.bfloat16)
        b = b.astype(jnp.float32)
        if i == len(params) - 1:
            w = jnp.pad(w, ((0, 0), (0, PAD_CLASSES - NUM_CLASSES)))
            b = jnp.pad(b, ((0, 0), (0, PAD_CLASSES - NUM_CLASSES)),
                        constant_values=NEG_BIG)
        prepared.append((w, b))
    return prepared


def my_neural_net_forward(x, params, *, tb=1024):
    """x: [B, 1, 28, 28] float32 (NCHW). Returns log-probs [B, 10] float32."""
    if x.ndim != 4:
        raise ValueError("Expected input to a 4D tensor")
    if x.shape[1] != 1 or x.shape[2] != 28 or x.shape[3] != 28:
        raise ValueError("Expected each sample to have shape [1, 28, 28]")
    B = x.shape[0]

    # Flatten (same as torch .view(B, -1)); keep f32 -- the bf16 cast happens in-kernel,
    # so there is no extra wrapper-side HBM pass over the activations.
    x2d = x.reshape(B, IN_FEATURES).astype(jnp.float32)

    # Tile selection: TB multiple of 16, >= 2 tiles whenever the batch allows (so v7x's
    # two TensorCores both get work via dimension_semantics=("parallel",)), and TB chosen
    # to minimize batch padding.
    tb = max(16, (int(tb) // 16) * 16)
    B16 = _round_up(B, 16)
    n_tiles = max(1, -(-B16 // tb))
    if B16 > 16:
        n_tiles = max(n_tiles, 2)
    TB = _round_up(-(-B16 // n_tiles), 16)
    B_pad = n_tiles * TB
    if B_pad != B:
        x2d = jnp.pad(x2d, ((0, B_pad - B), (0, 0)))

    (w1, b1), (w2, b2), (w3, b3), (w4, b4) = prepare_params(params)
    weights = (w1, b1, w2, b2, w3, b3, w4, b4)

    flops = 2 * B_pad * sum(k * n for k, n in zip(DIMS[:-1], DIMS[1:]))
    bytes_accessed = (B_pad * IN_FEATURES * 4
                      + sum(int(w.size) * int(w.dtype.itemsize) for w in weights)
                      + B_pad * PAD_CLASSES * 4)
    cost = pl.CostEstimate(flops=int(flops),
                           transcendentals=int(B_pad * (NUM_CLASSES + 1)),
                           bytes_accessed=int(bytes_accessed))

    out = pl.pallas_call(
        mlp_kernel,
        out_shape=jax.ShapeDtypeStruct((B_pad, PAD_CLASSES), jnp.float32),
        grid=(n_tiles,),
        in_specs=[pl.BlockSpec((TB, IN_FEATURES), lambda i: (i, 0))]
                 + [pl.BlockSpec(w.shape, lambda i: (0, 0)) for w in weights],
        out_specs=pl.BlockSpec((TB, PAD_CLASSES), lambda i: (i, 0)),
        compiler_params=pltpu.CompilerParams(
            dimension_semantics=("parallel",),
            vmem_limit_bytes=48 * 1024 * 1024),
        cost_estimate=cost,
    )(x2d, *weights)
    return out[:B, :NUM_CLASSES]


def init_params(key):
    """Deterministic init matching nn.Linear shapes (weights stored as [in, out], f32)."""
    params = []
    for i, (fan_in, fan_out) in enumerate(zip(DIMS[:-1], DIMS[1:])):
        kw, kb, key = jax.random.split(jax.random.fold_in(key, i), 3)
        bound = 1.0 / (fan_in ** 0.5)  # torch.nn.Linear default init range
        w = jax.random.uniform(kw, (fan_in, fan_out), jnp.float32, -bound, bound)
        b = jax.random.uniform(kb, (1, fan_out), jnp.float32, -bound, bound)
        params.append((w, b))
    return params


def reference_forward(x, params):
    """Pure-JAX reference mirroring the kernel's bf16-weight / f32-accumulate math."""
    B = x.shape[0]
    prepared = prepare_params(params)
    h = x.reshape(B, IN_FEATURES).astype(jnp.bfloat16)
    for (w, b) in prepared[:-1]:
        h = jnp.maximum(jnp.dot(h, w, preferred_element_type=jnp.float32) + b, 0.0)
        h = h.astype(jnp.bfloat16)
    w4, b4 = prepared[-1]
    logits = (jnp.dot(h, w4[:, :NUM_CLASSES], preferred_element_type=jnp.float32)
              + b4[:, :NUM_CLASSES])
    return jax.nn.log_softmax(logits, axis=1)


if __name__ == "__main__":
    key = jax.random.PRNGKey(0)
    k_x, k_p = jax.random.split(key)
    B = 8
    x = jax.random.normal(k_x, (B, 1, 28, 28), jnp.float32)
    params = init_params(k_p)

    out = jax.block_until_ready(my_neural_net_forward(x, params))

    ref = reference_forward(x, params)
    assert out.shape == (B, NUM_CLASSES)
    assert bool(jnp.all(jnp.isfinite(out)))
    assert jnp.allclose(out, ref, atol=1e-2, rtol=1e-2), \
        float(jnp.max(jnp.abs(out - ref)))
    print("KERNEL_OK")
</pallas_src>

<mosaic_0001>
module attributes {stable_mosaic.version = 11 : i64} {
  func.func @mlp_kernel(%arg0: i32, %arg1: memref<16x784xf32, #tpu.memory_space<vmem>>, %arg2: memref<784x256xbf16, #tpu.memory_space<vmem>>, %arg3: memref<1x256xf32, #tpu.memory_space<vmem>>, %arg4: memref<256x128xbf16, #tpu.memory_space<vmem>>, %arg5: memref<1x128xf32, #tpu.memory_space<vmem>>, %arg6: memref<128x64xbf16, #tpu.memory_space<vmem>>, %arg7: memref<1x64xf32, #tpu.memory_space<vmem>>, %arg8: memref<64x128xbf16, #tpu.memory_space<vmem>>, %arg9: memref<1x128xf32, #tpu.memory_space<vmem>>, %arg10: memref<16x128xf32, #tpu.memory_space<vmem>>) attributes {dimension_semantics = [#tpu.dimension_semantics<parallel>], iteration_bounds = array<i64: 1>, scalar_prefetch = 0 : i64, scratch_operands = 0 : i64, tpu.core_type = #tpu.core_type<tc>, window_params = [{transform_indices = @transform_0, window_bounds = array<i64: 16, 784>}, {pipeline_mode = #tpu.pipeline_mode<synchronous>, transform_indices = @transform_1, window_bounds = array<i64: 784, 256>}, {pipeline_mode = #tpu.pipeline_mode<synchronous>, transform_indices = @transform_2, window_bounds = array<i64: 1, 256>}, {pipeline_mode = #tpu.pipeline_mode<synchronous>, transform_indices = @transform_3, window_bounds = array<i64: 256, 128>}, {pipeline_mode = #tpu.pipeline_mode<synchronous>, transform_indices = @transform_4, window_bounds = array<i64: 1, 128>}, {pipeline_mode = #tpu.pipeline_mode<synchronous>, transform_indices = @transform_5, window_bounds = array<i64: 128, 64>}, {pipeline_mode = #tpu.pipeline_mode<synchronous>, transform_indices = @transform_6, window_bounds = array<i64: 1, 64>}, {pipeline_mode = #tpu.pipeline_mode<synchronous>, transform_indices = @transform_7, window_bounds = array<i64: 64, 128>}, {pipeline_mode = #tpu.pipeline_mode<synchronous>, transform_indices = @transform_8, window_bounds = array<i64: 1, 128>}, {transform_indices = @transform_9, window_bounds = array<i64: 16, 128>}]} {
    %c0 = arith.constant 0 : index
    %c0_0 = arith.constant 0 : index
    %0 = vector.load %arg1[%c0, %c0_0] : memref<16x784xf32, #tpu.memory_space<vmem>>, vector<16x784xf32>
    %1 = arith.truncf %0 : vector<16x784xf32> to vector<16x784xbf16>
    %c0_1 = arith.constant 0 : index
    %c0_2 = arith.constant 0 : index
    %2 = vector.load %arg2[%c0_1, %c0_2] : memref<784x256xbf16, #tpu.memory_space<vmem>>, vector<784x256xbf16>
    %cst = arith.constant dense<0.000000e+00> : vector<16x256xf32>
    %3 = tpu.matmul %1, %2, %cst {dimension_numbers = #tpu.dot_dimension_numbers<[1], [0], [0], [1], [0, 0, 1, 1], [], []>} : vector<16x784xbf16>, vector<784x256xbf16>, vector<16x256xf32> -> vector<16x256xf32>
    %c0_3 = arith.constant 0 : index
    %c0_4 = arith.constant 0 : index
    %4 = vector.load %arg3[%c0_3, %c0_4] : memref<1x256xf32, #tpu.memory_space<vmem>>, vector<1x256xf32>
    %5 = vector.broadcast %4 : vector<1x256xf32> to vector<16x256xf32>
    %6 = arith.addf %3, %5 : vector<16x256xf32>
    %cst_5 = arith.constant 0.000000e+00 : f32
    %7 = vector.broadcast %cst_5 : f32 to vector<16x256xf32>
    %8 = arith.maximumf %6, %7 : vector<16x256xf32>
    %9 = arith.truncf %8 : vector<16x256xf32> to vector<16x256xbf16>
    %c0_6 = arith.constant 0 : index
    %c0_7 = arith.constant 0 : index
    %10 = vector.load %arg4[%c0_6, %c0_7] : memref<256x128xbf16, #tpu.memory_space<vmem>>, vector<256x128xbf16>
    %cst_8 = arith.constant dense<0.000000e+00> : vector<16x128xf32>
    %11 = tpu.matmul %9, %10, %cst_8 {dimension_numbers = #tpu.dot_dimension_numbers<[1], [0], [0], [1], [0, 0, 1, 1], [], []>} : vector<16x256xbf16>, vector<256x128xbf16>, vector<16x128xf32> -> vector<16x128xf32>
    %c0_9 = arith.constant 0 : index
    %c0_10 = arith.constant 0 : index
    %12 = vector.load %arg5[%c0_9, %c0_10] : memref<1x128xf32, #tpu.memory_space<vmem>>, vector<1x128xf32>
    %13 = vector.broadcast %12 : vector<1x128xf32> to vector<16x128xf32>
    %14 = arith.addf %11, %13 : vector<16x128xf32>
    %cst_11 = arith.constant 0.000000e+00 : f32
    %15 = vector.broadcast %cst_11 : f32 to vector<16x128xf32>
    %16 = arith.maximumf %14, %15 : vector<16x128xf32>
    %17 = arith.truncf %16 : vector<16x128xf32> to vector<16x128xbf16>
    %c0_12 = arith.constant 0 : index
    %c0_13 = arith.constant 0 : index
    %18 = vector.load %arg6[%c0_12, %c0_13] : memref<128x64xbf16, #tpu.memory_space<vmem>>, vector<128x64xbf16>
    %cst_14 = arith.constant dense<0.000000e+00> : vector<16x64xf32>
    %19 = tpu.matmul %17, %18, %cst_14 {dimension_numbers = #tpu.dot_dimension_numbers<[1], [0], [0], [1], [0, 0, 1, 1], [], []>} : vector<16x128xbf16>, vector<128x64xbf16>, vector<16x64xf32> -> vector<16x64xf32>
    %c0_15 = arith.constant 0 : index
    %c0_16 = arith.constant 0 : index
    %20 = vector.load %arg7[%c0_15, %c0_16] : memref<1x64xf32, #tpu.memory_space<vmem>>, vector<1x64xf32>
    %21 = vector.broadcast %20 : vector<1x64xf32> to vector<16x64xf32>
    %22 = arith.addf %19, %21 : vector<16x64xf32>
    %cst_17 = arith.constant 0.000000e+00 : f32
    %23 = vector.broadcast %cst_17 : f32 to vector<16x64xf32>
    %24 = arith.maximumf %22, %23 : vector<16x64xf32>
    %25 = arith.truncf %24 : vector<16x64xf32> to vector<16x64xbf16>
    %c0_18 = arith.constant 0 : index
    %c0_19 = arith.constant 0 : index
    %26 = vector.load %arg8[%c0_18, %c0_19] : memref<64x128xbf16, #tpu.memory_space<vmem>>, vector<64x128xbf16>
    %cst_20 = arith.constant dense<0.000000e+00> : vector<16x128xf32>
    %27 = tpu.matmul %25, %26, %cst_20 {dimension_numbers = #tpu.dot_dimension_numbers<[1], [0], [0], [1], [0, 0, 1, 1], [], []>} : vector<16x64xbf16>, vector<64x128xbf16>, vector<16x128xf32> -> vector<16x128xf32>
    %c0_21 = arith.constant 0 : index
    %c0_22 = arith.constant 0 : index
    %28 = vector.load %arg9[%c0_21, %c0_22] : memref<1x128xf32, #tpu.memory_space<vmem>>, vector<1x128xf32>
    %29 = vector.broadcast %28 : vector<1x128xf32> to vector<16x128xf32>
    %30 = arith.addf %27, %29 : vector<16x128xf32>
    %cst_23 = arith.constant dense<0xFF800000> : vector<16xf32>
    %31 = vector.multi_reduction <maximumf>, %30, %cst_23 [1] : vector<16x128xf32> to vector<16xf32>
    %32 = vector.shape_cast %31 : vector<16xf32> to vector<16x1xf32>
    %33 = vector.broadcast %32 : vector<16x1xf32> to vector<16x128xf32>
    %34 = arith.subf %30, %33 : vector<16x128xf32>
    %35 = math.exp %34 : vector<16x128xf32>
    %cst_24 = arith.constant dense<0.000000e+00> : vector<16xf32>
    %36 = vector.multi_reduction <add>, %35, %cst_24 [1] : vector<16x128xf32> to vector<16xf32>
    %37 = vector.shape_cast %36 : vector<16xf32> to vector<16x1xf32>
    %38 = math.log %37 : vector<16x1xf32>
    %39 = vector.broadcast %38 : vector<16x1xf32> to vector<16x128xf32>
    %40 = arith.subf %34, %39 : vector<16x128xf32>
    %c0_25 = arith.constant 0 : index
    %c0_26 = arith.constant 0 : index
    %41 = vector.load %arg10[%c0_25, %c0_26] : memref<16x128xf32, #tpu.memory_space<vmem>>, vector<16x128xf32>
    tpu.vector_store %arg10[%c0_25, %c0_26], %40 {strides = array<i32>} : memref<16x128xf32, #tpu.memory_space<vmem>>, vector<16x128xf32>,
    return
  }
  func.func @transform_0(%arg0: i32) -> (i32, i32) {
    %c0_i32 = arith.constant 0 : i32
    %c0_i32_0 = arith.constant 0 : i32
    return %arg0, %c0_i32 : i32, i32
  }
  func.func @transform_1(%arg0: i32) -> (i32, i32) {
    %c0_i32 = arith.constant 0 : i32
    %c0_i32_0 = arith.constant 0 : i32
    %c0_i32_1 = arith.constant 0 : i32
    return %c0_i32, %c0_i32_0 : i32, i32
  }
  func.func @transform_2(%arg0: i32) -> (i32, i32) {
    %c0_i32 = arith.constant 0 : i32
    %c0_i32_0 = arith.constant 0 : i32
    %c0_i32_1 = arith.constant 0 : i32
    return %c0_i32, %c0_i32_0 : i32, i32
  }
  func.func @transform_3(%arg0: i32) -> (i32, i32) {
    %c0_i32 = arith.constant 0 : i32
    %c0_i32_0 = arith.constant 0 : i32
    %c0_i32_1 = arith.constant 0 : i32
    return %c0_i32, %c0_i32_0 : i32, i32
  }
  func.func @transform_4(%arg0: i32) -> (i32, i32) {
    %c0_i32 = arith.constant 0 : i32
    %c0_i32_0 = arith.constant 0 : i32
    %c0_i32_1 = arith.constant 0 : i32
    return %c0_i32, %c0_i32_0 : i32, i32
  }
  func.func @transform_5(%arg0: i32) -> (i32, i32) {
    %c0_i32 = arith.constant 0 : i32
    %c0_i32_0 = arith.constant 0 : i32
    %c0_i32_1 = arith.constant 0 : i32
    return %c0_i32, %c0_i32_0 : i32, i32
  }
  func.func @transform_6(%arg0: i32) -> (i32, i32) {
    %c0_i32 = arith.constant 0 : i32
    %c0_i32_0 = arith.constant 0 : i32
    %c0_i32_1 = arith.constant 0 : i32
    return %c0_i32, %c0_i32_0 : i32, i32
  }
  func.func @transform_7(%arg0: i32) -> (i32, i32) {
    %c0_i32 = arith.constant 0 : i32
    %c0_i32_0 = arith.constant 0 : i32
    %c0_i32_1 = arith.constant 0 : i32
    return %c0_i32, %c0_i32_0 : i32, i32
  }
  func.func @transform_8(%arg0: i32) -> (i32, i32) {
    %c0_i32 = arith.constant 0 : i32
    %c0_i32_0 = arith.constant 0 : i32
    %c0_i32_1 = arith.constant 0 : i32
    return %c0_i32, %c0_i32_0 : i32, i32
  }
  func.func @transform_9(%arg0: i32) -> (i32, i32) {
    %c0_i32 = arith.constant 0 : i32
    %c0_i32_0 = arith.constant 0 : i32
    return %arg0, %c0_i32 : i32, i32
  }
}

</mosaic_0001>

<bundles_post_ra>
// kernel: tpu_custom_call.1
= control target key start
LH: loop header
LB: loop body
LE: loop exit
PB: predicated region body
PF: predicated region fallthrough
CT: control target
= control target key end

     0   :  { %14 = vsyncpa [#allocation3], 0  ;;  %s1982_s0 = inlined_call_operand.hbm [shape: f32[16,784], index: 0, kind: input, shape index: {}]   ;;  %s1983_s1 = inlined_call_operand.hbm [shape: bf16[784,256], index: 1, kind: input, shape index: {}]   ;;  %s1984_s2 = inlined_call_operand.vmem [shape: f32[1,256], index: 2, kind: input, shape index: {}]   ;;  %s1985_s3 = inlined_call_operand.hbm [shape: bf16[256,128], index: 3, kind: input, shape index: {}]   ;;  %s1986_s4 = inlined_call_operand.vmem [shape: f32[1,128], index: 4, kind: input, shape index: {}]   ;;  %s1987_s5 = inlined_call_operand.vmem [shape: bf16[128,64], index: 5, kind: input, shape index: {}]   ;;  %s1988_s6 = inlined_call_operand.vmem [shape: f32[1,64], index: 6, kind: input, shape index: {}]   ;;  %s1989_s7 = inlined_call_operand.vmem [shape: bf16[64,128], index: 7, kind: input, shape index: {}]   ;;  %s1990_s8 = inlined_call_operand.vmem [shape: f32[1,128], index: 8, kind: input, shape index: {}]   ;;  %s1991_s9 = inlined_call_operand.hbm [shape: f32[16,128], index: 9, kind: output, shape index: {}]  }
   0x1   :  { %15 = vsyncpa [#allocation6], 0 }
   0x2   :  { %16 = vsyncpa [#allocation4], 0  ;;  %s1801_s30 = smov [#allocation5]   ;;  %s1707_s13 = scalar_lea.hbm %s1983_s1, 12544 }
   0x3   :  { %s34_s10 = sshll.u32 %s1801_s30, 4  ;;  %p1708_p0 = scmp.ne.s32.totalorder %s1983_s1, %s1707_s13  ;;  %s35_s10 = int_to_ptr.vmem [resolvable:$true] %s34_s10 }
   0x4   :  { %p1711_p1 = scmp.lt.u32.totalorder %s1707_s13, %s1983_s1 }
   0x6   :  { %p1713_p2 = pnand %p1711_p1, %p1708_p0 }
   0x8   :  { %1716 = shalt.err (!%p1713_p2)
}
   0x9   :  { %s1717_s18 = scalar_lea.vmem %s35_s10, 12544  ;;  %p1722_p4 = scmp.lt.s32.totalorder %s35_s10, %s35_s10 }
   0xa   :  { %p1718_p3 = scmp.ne.s32.totalorder %s35_s10, %s1717_s18  ;;  %p1723_p5 = scmp.lt.s32.totalorder %s1717_s18, %s1717_s18 }
   0xc   :  { %p1724_p6 = por %p1723_p5, %p1722_p4 }
   0xe   :  { %p1725_p7 = pnand %p1724_p6, %p1718_p3 }
  0x10   :  { %1728 = shalt.err (!%p1725_p7)
}
  0x11   :  { %s1802_s19 = smov 128   ;;  %s1803_s20 = smov 8  }
  0x12   :  { %40 = dma.hbm_to_vmem [thread:$0]  %s1983_s1, 12544, %s35_s10, [#allocation6], %s1802_s19, %s1802_s19, %s1803_s20  }
  0x13   :  { %s1804_s23 = smov [#allocation2]   ;;  %s1729_s27 = scalar_lea.hbm %s1982_s0, 1792 }
  0x14   :  { %s22_s24 = sshll.u32 %s1804_s23, 4  ;;  %p1730_p8 = scmp.ne.s32.totalorder %s1982_s0, %s1729_s27  ;;  %s23_s24 = int_to_ptr.vmem [resolvable:$true] %s22_s24 }
  0x15   :  { %p1733_p9 = scmp.lt.u32.totalorder %s1729_s27, %s1982_s0 }
  0x17   :  { %p1735_p10 = pnand %p1733_p9, %p1730_p8 }
  0x19   :  { %1738 = shalt.err (!%p1735_p10)
}
  0x1a   :  { %s1739_s12 = scalar_lea.vmem %s23_s24, 1792  ;;  %p1744_p12 = scmp.lt.s32.totalorder %s23_s24, %s23_s24 }
  0x1b   :  { %p1740_p11 = scmp.ne.s32.totalorder %s23_s24, %s1739_s12  ;;  %p1745_p13 = scmp.lt.s32.totalorder %s1739_s12, %s1739_s12 }
  0x1d   :  { %p1746_p0 = por %p1745_p13, %p1744_p12 }
  0x1f   :  { %p1747_p1 = pnand %p1746_p0, %p1740_p11 }
  0x21   :  { %1750 = shalt.err (!%p1747_p1)
}
  0x22   :  { %s1805_s1 = smov 896   ;;  %s1806_s10 = smov 56  }
  0x23   :  { %28 = dma.hbm_to_vmem [thread:$0]  %s1982_s0, 1792, %s23_s24, [#allocation3], %s1805_s1, %s1805_s1, %s1806_s10  }
  0x24   :  { %s1807_s15 = smov [#allocation7]   ;;  %s1751_s21 = scalar_lea.hbm %s1985_s3, 2048 }
  0x25   :  { %s48_s16 = sshll.u32 %s1807_s15, 4  ;;  %p1752_p2 = scmp.ne.s32.totalorder %s1985_s3, %s1751_s21  ;;  %s49_s16 = int_to_ptr.vmem [resolvable:$true] %s48_s16 }
  0x26   :  { %p1755_p3 = scmp.lt.u32.totalorder %s1751_s21, %s1985_s3 }
  0x28   :  { %p1757_p4 = pnand %p1755_p3, %p1752_p2 }
  0x2a   :  { %1760 = shalt.err (!%p1757_p4)
}
  0x2b   :  { %s1761_s27 = scalar_lea.vmem %s49_s16, 2048  ;;  %p1766_p6 = scmp.lt.s32.totalorder %s49_s16, %s49_s16 }
  0x2c   :  { %p1762_p5 = scmp.ne.s32.totalorder %s49_s16, %s1761_s27  ;;  %p1767_p7 = scmp.lt.s32.totalorder %s1761_s27, %s1761_s27 }
  0x2e   :  { %p1768_p8 = por %p1767_p7, %p1766_p6 }
  0x30   :  { %p1769_p9 = pnand %p1768_p8, %p1762_p5 }
  0x32   :  { %1772 = shalt.err (!%p1769_p9)
}
  0x33   :  { %s1808_s0 = smov 64   ;;  %s1809_s24 = smov 4  }
  0x34   :  { %54 = dma.hbm_to_vmem [thread:$0]  %s1985_s3, 2048, %s49_s16, [#allocation6], %s1808_s0, %s1808_s0, %s1809_s24  }
  0x35   :  { %1795 = dma.done.wait [#allocation3], 1792  }
  0x36   :  { %1796 = vsyncadd [#allocation3], 4294965504 }
  0x37   :  { %1797 = dma.done.wait [#allocation6], 14592  }
  0x38   :  { %1798 = vsyncadd [#allocation6], 4294952704  ;;  %v1524_v0 = vld [vmem:[#allocation5 + $0x104] ss:$8 sps:$4 sm:$0xff]   ;;  %v1526_v1 = vld [vmem:[#allocation5 + $0x100] ss:$8 sps:$4 sm:$0xff]  }
  0x39   :  { %743 = vmatprep.subr.bf16.mxu0 %v1524_v0  ;;  %v1527_v2 = vld [vmem:[#allocation5 + $0x114] ss:$8 sps:$4 sm:$0xff]   ;;  %v1529_v3 = vld [vmem:[#allocation5 + $0x110] ss:$8 sps:$4 sm:$0xff]   ;;  %v1530_v4 = vld [vmem:[#allocation5 + $0x124] ss:$8 sps:$4 sm:$0xff]  }
  0x3a   :  { %744 = vmatpush1.bf16.msra.mxu0 %v1526_v1  ;;  %v1532_v5 = vld [vmem:[#allocation5 + $0x120] ss:$8 sps:$4 sm:$0xff]   ;;  %v1533_v6 = vld [vmem:[#allocation5 + $0x134] ss:$8 sps:$4 sm:$0xff]   ;;  %v1535_v7 = vld [vmem:[#allocation5 + $0x130] ss:$8 sps:$4 sm:$0xff]  }
  0x3b   :  { %745 = vmatprep.subr.bf16.mxu0 %v1527_v2  ;;  %v1536_v8 = vld [vmem:[#allocation5 + $0x144] ss:$8 sps:$4 sm:$0xff]   ;;  %v1538_v9 = vld [vmem:[#allocation5 + $0x140] ss:$8 sps:$4 sm:$0xff]   ;;  %v1539_v10 = vld [vmem:[#allocation5 + $0x154] ss:$8 sps:$4 sm:$0xff]  }
  0x3c   :  { %v1541_v11 = vld [vmem:[#allocation5 + $0x150] ss:$8 sps:$4 sm:$0xff]   ;;  %v1542_v12 = vld [vmem:[#allocation5 + $0x164] ss:$8 sps:$4 sm:$0xff]   ;;  %v1544_v16 = vld [vmem:[#allocation5 + $0x160] ss:$8 sps:$4 sm:$0xff]  }
  0x3d   :  { %v78_v13 = vld [vmem:[#allocation2 + $0x18] sm:$0xff]  ;;  %v85_v14 = vld [vmem:[#allocation2 + $0x50] sm:$0xff]  ;;  %v1545_v17 = vld [vmem:[#allocation5 + $0x174] ss:$8 sps:$4 sm:$0xff]   ;;  %vm696_vm0 = vcmask 130048   ;;  %vm1812_vm1 = vmmov 0  }
  0x3e   :  { %746 = vmatpush1.bf16.msra.mxu0 %v1529_v3  ;;  %v92_v15 = vpack.c.bf16 %v85_v14, %v78_v13  ;;  %v1578_v18 = vld [vmem:[#allocation5 + $0x4] ss:$8 sps:$4 sm:$0xff]   ;;  %v1547_v19 = vld [vmem:[#allocation5 + $0x170] ss:$8 sps:$4 sm:$0xff]   ;;  %v1583_v21 = vld [vmem:[#allocation5] ss:$8 sps:$4 sm:$0xff]  }
  0x3f   :  { %747 = vmatprep.subr.bf16.mxu0 %v1530_v4  ;;  %v1548_v20 = vld [vmem:[#allocation5 + $0x184] ss:$8 sps:$4 sm:$0xff]   ;;  %700 = vmatprep.subr.bf16.mxu1 %v1578_v18  ;;  %v1584_v22 = vld [vmem:[#allocation5 + $0x14] ss:$8 sps:$4 sm:$0xff]   ;;  %v1550_v23 = vld [vmem:[#allocation5 + $0x180] ss:$8 sps:$4 sm:$0xff]  }
  0x40   :  { %775 = vmatprep.mubr.bf16.mxu0 %v92_v15  ;;  %701 = vmatpush1.bf16.msra.mxu1 %v1583_v21  ;;  %v1589_v24 = vld [vmem:[#allocation5 + $0x10] ss:$8 sps:$4 sm:$0xff]   ;;  %v1590_v25 = vld [vmem:[#allocation5 + $0x24] ss:$8 sps:$4 sm:$0xff]   ;;  %v1551_v26 = vld [vmem:[#allocation5 + $0x194] ss:$8 sps:$4 sm:$0xff]  }
  0x41   :  { %702 = vmatprep.subr.bf16.mxu1 %v1584_v22  ;;  %v1595_v27 = vld [vmem:[#allocation5 + $0x20] ss:$8 sps:$4 sm:$0xff]   ;;  %v1596_v28 = vld [vmem:[#allocation5 + $0x34] ss:$8 sps:$4 sm:$0xff]   ;;  %v1553_v29 = vld [vmem:[#allocation5 + $0x190] ss:$8 sps:$4 sm:$0xff]  }
  0x42   :  { %748 = vmatpush1.bf16.msra.mxu0 %v1532_v5  ;;  %v1554_v30 = vld [vmem:[#allocation5 + $0x1a4] ss:$8 sps:$4 sm:$0xff]   ;;  %v1601_v31 = vld [vmem:[#allocation5 + $0x30] ss:$8 sps:$4 sm:$0xff]   ;;  %v1556_v33 = vld [vmem:[#allocation5 + $0x1a0] ss:$8 sps:$4 sm:$0xff]  }
  0x43   :  { %749 = vmatprep.subr.bf16.mxu0 %v1533_v6  ;;  %v1602_v32 = vld [vmem:[#allocation5 + $0x44] ss:$8 sps:$4 sm:$0xff]   ;;  %v1557_v34 = vld [vmem:[#allocation5 + $0x1b4] ss:$8 sps:$4 sm:$0xff]   ;;  %v1607_v35 = vld [vmem:[#allocation5 + $0x40] ss:$8 sps:$4 sm:$0xff]  }
  0x44   :  { %703 = vmatpush1.bf16.msra.mxu1 %v1589_v24  ;;  %v1608_v36 = vld [vmem:[#allocation5 + $0x54] ss:$8 sps:$4 sm:$0xff]   ;;  %v1559_v37 = vld [vmem:[#allocation5 + $0x1b0] ss:$8 sps:$4 sm:$0xff]   ;;  %v1560_v38 = vld [vmem:[#allocation5 + $0x1c4] ss:$8 sps:$4 sm:$0xff]  }
  0x45   :  { %704 = vmatprep.subr.bf16.mxu1 %v1590_v25  ;;  %v1613_v39 = vld [vmem:[#allocation5 + $0x50] ss:$8 sps:$4 sm:$0xff]   ;;  %v1614_v40 = vld [vmem:[#allocation5 + $0x64] ss:$8 sps:$4 sm:$0xff]   ;;  %v1562_v41 = vld [vmem:[#allocation5 + $0x1c0] ss:$8 sps:$4 sm:$0xff]  }
  0x46   :  { %750 = vmatpush1.bf16.msra.mxu0 %v1535_v7  ;;  %v1563_v42 = vld [vmem:[#allocation5 + $0x1d4] ss:$8 sps:$4 sm:$0xff]   ;;  %v1619_v43 = vld [vmem:[#allocation5 + $0x60] ss:$8 sps:$4 sm:$0xff]   ;;  %v1565_v45 = vld [vmem:[#allocation5 + $0x1d0] ss:$8 sps:$4 sm:$0xff]  }
  0x47   :  { %751 = vmatprep.subr.bf16.mxu0 %v1536_v8  ;;  %v1620_v44 = vld [vmem:[#allocation5 + $0x74] ss:$8 sps:$4 sm:$0xff]   ;;  %v1566_v46 = vld [vmem:[#allocation5 + $0x1e4] ss:$8 sps:$4 sm:$0xff]   ;;  %v1625_v47 = vld [vmem:[#allocation5 + $0x70] ss:$8 sps:$4 sm:$0xff]  }
  0x48   :  { %705 = vmatpush1.bf16.msra.mxu1 %v1595_v27  ;;  %v1626_v48 = vld [vmem:[#allocation5 + $0x84] ss:$8 sps:$4 sm:$0xff]   ;;  %v1568_v49 = vld [vmem:[#allocation5 + $0x1e0] ss:$8 sps:$4 sm:$0xff]   ;;  %v1569_v50 = vld [vmem:[#allocation5 + $0x1f4] ss:$8 sps:$4 sm:$0xff]  }
  0x49   :  { %706 = vmatprep.subr.bf16.mxu1 %v1596_v28  ;;  %v1631_v51 = vld [vmem:[#allocation5 + $0x80] ss:$8 sps:$4 sm:$0xff]   ;;  %v1632_v52 = vld [vmem:[#allocation5 + $0x94] ss:$8 sps:$4 sm:$0xff]   ;;  %v1571_v53 = vld [vmem:[#allocation5 + $0x1f0] ss:$8 sps:$4 sm:$0xff]  }
  0x4a   :  { %752 = vmatpush1.bf16.msra.mxu0 %v1538_v9  ;;  %v77_v54 = vld [vmem:[#allocation2 + $0x10] sm:$0xff]  ;;  %v84_v55 = vld [vmem:[#allocation2 + $0x48] sm:$0xff]  ;;  %v87_v62 = vld [vmem:[#allocation2 + $0x60] sm:$0xff]  ;;  %vm1211_vm2 = vcmask 523264  }
  0x4b   :  { %753 = vmatprep.subr.bf16.mxu0 %v1539_v10  ;;  %v1574_v56 = vld [vmem:[#allocation5 + $0x204] ss:$8 sps:$4 sm:$0xff]   ;;  %v1637_v57 = vld [vmem:[#allocation5 + $0x90] ss:$8 sps:$4 sm:$0xff]   ;;  %v1572_v58 = vld [vmem:[#allocation5 + $0x200] ss:$8 sps:$4 sm:$0xff]   ;;  %v91_v59 = vpack.c.bf16 %v84_v55, %v77_v54 }
  0x4c   :  { %707 = vmatpush1.bf16.msra.mxu1 %v1601_v31  ;;  %v1638_v60 = vld [vmem:[#allocation5 + $0xa4] ss:$8 sps:$4 sm:$0xff]   ;;  %v80_v61 = vld [vmem:[#allocation2 + $0x28] sm:$0xff]  ;;  %v1643_v1 = vld [vmem:[#allocation5 + $0xa0] ss:$8 sps:$4 sm:$0xff]  }
  0x4d   :  { %708 = vmatprep.subr.bf16.mxu1 %v1602_v32  ;;  %v1577_v63 = vld [vmem:[#allocation5 + $0x214] ss:$8 sps:$4 sm:$0xff]   ;;  %v94_v0 = vpack.c.bf16 %v87_v62, %v80_v61  ;;  %v1575_v3 = vld [vmem:[#allocation5 + $0x210] ss:$8 sps:$4 sm:$0xff]   ;;  %v1582_v4 = vld [vmem:[#allocation5 + $0x224] ss:$8 sps:$4 sm:$0xff]  }
  0x4e   :  { %754 = vmatpush1.bf16.msra.mxu0 %v1541_v11  ;;  %v1644_v2 = vld [vmem:[#allocation5 + $0xb4] ss:$8 sps:$4 sm:$0xff]   ;;  %v1649_v7 = vld [vmem:[#allocation5 + $0xb0] ss:$8 sps:$4 sm:$0xff]   ;;  %v1650_v9 = vld [vmem:[#allocation5 + $0xc4] ss:$8 sps:$4 sm:$0xff]  }
  0x4f   :  { %755 = vmatprep.subr.bf16.mxu0 %v1542_v12  ;;  %v76_v5 = vld [vmem:[#allocation2 + $0x8] sm:$0xff]  ;;  %v83_v6 = vld [vmem:[#allocation2 + $0x40] sm:$0xff]  ;;  %v1580_v10 = vld [vmem:[#allocation5 + $0x220] ss:$8 sps:$4 sm:$0xff]   ;;  %v1810_v61 = vmov 0  }
  0x50   :  { %709 = vmatpush1.bf16.msra.mxu1 %v1607_v35  ;;  %v90_v8 = vpack.c.bf16 %v83_v6, %v76_v5  ;;  %v1588_v11 = vld [vmem:[#allocation5 + $0x234] ss:$8 sps:$4 sm:$0xff]   ;;  %v1655_v12 = vld [vmem:[#allocation5 + $0xc0] ss:$8 sps:$4 sm:$0xff]   ;;  %v1586_v14 = vld [vmem:[#allocation5 + $0x230] ss:$8 sps:$4 sm:$0xff]  }
  0x51   :  { %710 = vmatprep.subr.bf16.mxu1 %v1608_v36  ;;  %v1656_v13 = vld [vmem:[#allocation5 + $0xd4] ss:$8 sps:$4 sm:$0xff]   ;;  %v1594_v15 = vld [vmem:[#allocation5 + $0x244] ss:$8 sps:$4 sm:$0xff]   ;;  %v1598_v22 = vld [vmem:[#allocation5 + $0x250] ss:$8 sps:$4 sm:$0xff]  }
  0x52   :  { %756 = vmatpush1.bf16.msra.mxu0 %v1544_v16  ;;  %732 = vmatprep.mubr.bf16.mxu1 %v90_v8  ;;  %v1592_v16 = vld [vmem:[#allocation5 + $0x240] ss:$8 sps:$4 sm:$0xff]   ;;  %v1600_v18 = vld [vmem:[#allocation5 + $0x254] ss:$8 sps:$4 sm:$0xff]   ;;  %v1670_v24 = vld [vmem:[#allocation5 + $0xf0] ss:$8 sps:$4 sm:$0xff]  }
  0x53   :  { %757 = vmatprep.subr.bf16.mxu0 %v1545_v17  ;;  %v1661_v17 = vld [vmem:[#allocation5 + $0xd0] ss:$8 sps:$4 sm:$0xff]   ;;  %v1668_v21 = vld [vmem:[#allocation5 + $0xf4] ss:$8 sps:$4 sm:$0xff]   ;;  %v1604_v28 = vld [vmem:[#allocation5 + $0x260] ss:$8 sps:$4 sm:$0xff]  }
  0x54   :  { %711 = vmatpush1.bf16.msra.mxu1 %v1613_v39  ;;  %v75_v25 = vld [vmem:[#allocation2] sm:$0xff]  ;;  %v1673_v32 = vld [vmem:[#allocation7 + $0x48] sm:$0xff]   ;;  %v1675_v36 = vld [vmem:[#allocation7 + $0x50] sm:$0xff]   ;;  %v1811_v8 = vmov 0.0  }
  0x55   :  { %712 = vmatprep.subr.bf16.mxu1 %v1614_v40  ;;  %v1671_v27 = vld [vmem:[#allocation7 + $0x40] sm:$0xff]   ;;  %v1674_v35 = vld [vmem:[#allocation7 + $0x8] sm:$0xff]   ;;  %v1676_v39 = vld [vmem:[#allocation7 + $0x10] sm:$0xff]  }
  0x56   :  { %758 = vmatpush1.bf16.msra.mxu0 %v1547_v19  ;;  %v1662_v19 = vld [vmem:[#allocation5 + $0xe4] ss:$8 sps:$4 sm:$0xff]   ;;  %v1660_v54 = vld [vmem:[#allocation5 + $0x2f4] ss:$8 sps:$4 sm:$0xff]   ;;  %v1658_v55 = vld [vmem:[#allocation5 + $0x2f0] ss:$8 sps:$4 sm:$0xff]  }
  0x57   :  { %759 = vmatprep.subr.bf16.mxu0 %v1548_v20  ;;  %v1667_v20 = vld [vmem:[#allocation5 + $0xe0] ss:$8 sps:$4 sm:$0xff]  }
  0x58   :  { %713 = vmatpush1.bf16.msra.mxu1 %v1619_v43  ;;  %v1677_v40 = vld [vmem:[#allocation7 + $0x58] sm:$0xff]   ;;  %v81_v62 = vld [vmem:[#allocation2 + $0x30] sm:$0xff] }
  0x59   :  { %714 = vmatprep.subr.bf16.mxu1 %v1620_v44  ;;  %v1678_v43 = vld [vmem:[#allocation7 + $0x18] sm:$0xff]   ;;  %v1679_v44 = vld [vmem:[#allocation7 + $0x60] sm:$0xff]   ;;  %v1684_v5 = vld [vmem:[#allocation7 + $0x30] sm:$0xff]  }
  0x5a   :  { %760 = vmatpush1.bf16.msra.mxu0 %v1550_v23  ;;  %v1606_v23 = vld [vmem:[#allocation5 + $0x264] ss:$8 sps:$4 sm:$0xff]  }
  0x5b   :  { %761 = vmatprep.subr.bf16.mxu0 %v1551_v26  ;;  %v82_v26 = vld [vmem:[#allocation2 + $0x38] sm:$0xff] }
  0x5c   :  { %715 = vmatpush1.bf16.msra.mxu1 %v1625_v47  ;;  %v89_v31 = vpack.c.bf16 %v82_v26, %v75_v25  ;;  %v1634_v47 = vld [vmem:[#allocation5 + $0x2b0] ss:$8 sps:$4 sm:$0xff]   ;;  %v1685_v6 = vld [vmem:[#allocation7 + $0x78] sm:$0xff]  }
  0x5d   :  { %716 = vmatprep.subr.bf16.mxu1 %v1626_v48  ;;  %v1642_v48 = vld [vmem:[#allocation5 + $0x2c4] ss:$8 sps:$4 sm:$0xff]  }
  0x5e   :  { %762 = vmatpush1.bf16.msra.mxu0 %v1553_v29  ;;  %v1612_v29 = vld [vmem:[#allocation5 + $0x274] ss:$8 sps:$4 sm:$0xff]  }
  0x5f   :  { %763 = vmatprep.subr.bf16.mxu0 %v1554_v30  ;;  %v1672_v30 = vld [vmem:[#allocation7] sm:$0xff]  }
  0x60   :  { %717 = vmatpush1.bf16.msra.mxu1 %v1631_v51  ;;  %v1646_v51 = vld [vmem:[#allocation5 + $0x2d0] ss:$8 sps:$4 sm:$0xff]  }
  0x61   :  { %718 = vmatprep.subr.bf16.mxu1 %v1632_v52  ;;  %v1654_v52 = vld [vmem:[#allocation5 + $0x2e4] ss:$8 sps:$4 sm:$0xff]  }
  0x62   :  { %764 = vmatpush1.bf16.msra.mxu0 %v1556_v33  ;;  %v1610_v33 = vld [vmem:[#allocation5 + $0x270] ss:$8 sps:$4 sm:$0xff]  }
  0x63   :  { %765 = vmatprep.subr.bf16.mxu0 %v1557_v34  ;;  %v1618_v34 = vld [vmem:[#allocation5 + $0x284] ss:$8 sps:$4 sm:$0xff]  }
  0x64   :  { %719 = vmatpush1.bf16.msra.mxu1 %v1637_v57  ;;  %v86_v57 = vld [vmem:[#allocation2 + $0x58] sm:$0xff] }
  0x65   :  { %720 = vmatprep.subr.bf16.mxu1 %v1638_v60  ;;  %v1664_v60 = vld [vmem:[#allocation5 + $0x300] ss:$8 sps:$4 sm:$0xff]  }
  0x66   :  { %766 = vmatpush1.bf16.msra.mxu0 %v1559_v37  ;;  %v1616_v37 = vld [vmem:[#allocation5 + $0x280] ss:$8 sps:$4 sm:$0xff]  }
  0x67   :  { %767 = vmatprep.subr.bf16.mxu0 %v1560_v38  ;;  %v1624_v38 = vld [vmem:[#allocation5 + $0x294] ss:$8 sps:$4 sm:$0xff]  }
  0x68   :  { %721 = vmatpush1.bf16.msra.mxu1 %v1643_v1  ;;  %v1680_v1 = vld [vmem:[#allocation7 + $0x20] sm:$0xff]  }
  0x69   :  { %722 = vmatprep.subr.bf16.mxu1 %v1644_v2  ;;  %v1681_v2 = vld [vmem:[#allocation7 + $0x68] sm:$0xff]  }
  0x6a   :  { %768 = vmatpush1.bf16.msra.mxu0 %v1562_v41  ;;  %v1622_v41 = vld [vmem:[#allocation5 + $0x290] ss:$8 sps:$4 sm:$0xff]  }
  0x6b   :  { %769 = vmatprep.subr.bf16.mxu0 %v1563_v42  ;;  %v1630_v42 = vld [vmem:[#allocation5 + $0x2a4] ss:$8 sps:$4 sm:$0xff]  }
  0x6c   :  { %723 = vmatpush1.bf16.msra.mxu1 %v1649_v7  ;;  %v1686_v7 = vld [vmem:[#allocation7 + $0x38] sm:$0xff]  }
  0x6d   :  { %724 = vmatprep.subr.bf16.mxu1 %v1650_v9 }
  0x6e   :  { %770 = vmatpush1.bf16.msra.mxu0 %v1565_v45  ;;  %v1628_v45 = vld [vmem:[#allocation5 + $0x2a0] ss:$8 sps:$4 sm:$0xff]  }
  0x6f   :  { %771 = vmatprep.subr.bf16.mxu0 %v1566_v46  ;;  %v1636_v46 = vld [vmem:[#allocation5 + $0x2b4] ss:$8 sps:$4 sm:$0xff]  }
  0x70   :  { %725 = vmatpush1.bf16.msra.mxu1 %v1655_v12 }
  0x71   :  { %726 = vmatprep.subr.bf16.mxu1 %v1656_v13  ;;  %v196_v13 = vlaneseq }
  0x72   :  { %772 = vmatpush1.bf16.msra.mxu0 %v1568_v49  ;;  %v1640_v49 = vld [vmem:[#allocation5 + $0x2c0] ss:$8 sps:$4 sm:$0xff]  }
  0x73   :  { %773 = vmatprep.subr.bf16.mxu0 %v1569_v50  ;;  %v1648_v50 = vld [vmem:[#allocation5 + $0x2d4] ss:$8 sps:$4 sm:$0xff]  }
  0x74   :  { %727 = vmatpush1.bf16.msra.mxu1 %v1661_v17 }
  0x75   :  { %728 = vmatprep.subr.bf16.mxu1 %v1662_v19 }
  0x76   :  { %774 = vmatpush1.bf16.msra.mxu0 %v1571_v53  ;;  %v1652_v53 = vld [vmem:[#allocation5 + $0x2e0] ss:$8 sps:$4 sm:$0xff]  }
  0x77   :  { %786 = vmatprep.subr.bf16.mxu0 %v1574_v56  ;;  %v79_v56 = vld [vmem:[#allocation2 + $0x20] sm:$0xff] }
  0x78   :  { %729 = vmatpush1.bf16.msra.mxu1 %v1667_v20 }
  0x79   :  { %776 = vmatmul.mubr.bf16.vlgmr.msra.gmra.mrb[0].mxu0 %v91_v59  ;;  %730 = vmatprep.subr.bf16.mxu1 %v1668_v21  ;;  %v93_v59 = vpack.c.bf16 %v86_v57, %v79_v56  ;;  %v1695_v57 = vld [vmem:[%s1989_s7] sm:$0xff]  }
  0x7a   :  { %787 = vmatpush1.bf16.msra.mxu0 %v1572_v58  ;;  %818 = vmatprep.mubr.bf16.mxu0 %v94_v0  ;;  %v1666_v58 = vld [vmem:[#allocation5 + $0x304] ss:$8 sps:$4 sm:$0xff]  }
  0x7b   :  { %788 = vmatprep.subr.bf16.mxu0 %v1577_v63  ;;  %v88_v63 = vld [vmem:[#allocation2 + $0x68] sm:$0xff] }
  0x7c   :  { %731 = vmatpush1.bf16.msra.mxu1 %v1670_v24  ;;  %v95_v0 = vpack.c.bf16 %v88_v63, %v81_v62  ;;  %v1412_v62 = vld [vmem:[%s1988_s6] ss:$0 sm:$0xff]  ;;  %s1813_s6 = smov [#allocation8]  }
  0x7d   :  { %1427 = vmatprep.subr.bf16.mxu1 %v1671_v27 }
  0x7e   :  { %789 = vmatpush1.bf16.msra.mxu0 %v1575_v3  ;;  %v1682_v3 = vld [vmem:[#allocation7 + $0x28] sm:$0xff]  }
  0x7f   :  { %790 = vmatprep.subr.bf16.mxu0 %v1582_v4  ;;  %733 = vmatmul.mubr.bf16.vlgmr.msra.gmra.mrb[0].mxu1 %v89_v31  ;;  %v1683_v4 = vld [vmem:[#allocation7 + $0x70] sm:$0xff]  }
  0x80   :  { %1428 = vmatpush3.bf16.msra.mxu1 %v1672_v30 }
  0x81   :  { %1429 = vmatprep.subr.bf16.mxu1 %v1673_v32 }
  0x82   :  { %791 = vmatpush1.bf16.msra.mxu0 %v1580_v10 }
  0x83   :  { %792 = vmatprep.subr.bf16.mxu0 %v1588_v11 }
  0x84   :  { %1430 = vmatpush3.bf16.msra.mxu1 %v1674_v35 }
  0x85   :  { %1431 = vmatprep.subr.bf16.mxu1 %v1675_v36 }
  0x86   :  { %793 = vmatpush1.bf16.msra.mxu0 %v1586_v14  ;;  %v197_v14 = vshrl.u32 %v196_v13, 7 }
  0x87   :  { %794 = vmatprep.subr.bf16.mxu0 %v1594_v15 }
  0x88   :  { %1432 = vmatpush3.bf16.msra.mxu1 %v1676_v39  ;;  %v198_v15 = vsub.s32 0, %v197_v14  ;;  %v202_v17 = vsub.s32 1, %v197_v14  ;;  %v1688_v39 = vld [vmem:[%s1987_s5 + $0x8] sm:$0xff]  }
  0x89   :  { %1433 = vmatprep.subr.bf16.mxu1 %v1677_v40  ;;  %v1689_v40 = vld [vmem:[%s1987_s5 + $0x10] sm:$0xff]  }
  0x8a   :  { %795 = vmatpush1.bf16.msra.mxu0 %v1592_v16  ;;  %v194_v16 = vld [vmem:[%s1984_s2] sm:$0x3] }
  0x8b   :  { %796 = vmatprep.subr.bf16.mxu0 %v1600_v18  ;;  %v199_v18 = vrot.slane %v194_v16, %v198_v15  ;;  %v203_v19 = vrot.slane %v194_v16, %v202_v17 }
  0x8c   :  { %1434 = vmatpush3.bf16.msra.mxu1 %v1678_v43  ;;  %v1692_v43 = vld [vmem:[%s1987_s5 + $0x28] sm:$0xff]  }
  0x8d   :  { %1435 = vmatprep.subr.bf16.mxu1 %v1679_v44  ;;  %v1693_v44 = vld [vmem:[%s1987_s5 + $0x30] sm:$0xff]  }
  0x8e   :  { %797 = vmatpush1.bf16.msra.mxu0 %v1598_v22 }
  0x8f   :  { %798 = vmatprep.subr.bf16.mxu0 %v1606_v23 }
  0x90   :  { %1436 = vmatpush3.bf16.msra.mxu1 %v1680_v1 }
  0x91   :  { %1437 = vmatprep.subr.bf16.mxu1 %v1681_v2 }
  0x92   :  { %799 = vmatpush1.bf16.msra.mxu0 %v1604_v28 }
  0x93   :  { %800 = vmatprep.subr.bf16.mxu0 %v1612_v29 }
  0x94   :  { %1438 = vmatpush3.bf16.msra.mxu1 %v1682_v3 }
  0x95   :  { %1439 = vmatprep.subr.bf16.mxu1 %v1683_v4 }
  0x96   :  { %801 = vmatpush1.bf16.msra.mxu0 %v1610_v33 }
  0x97   :  { %802 = vmatprep.subr.bf16.mxu0 %v1618_v34 }
  0x98   :  { %1440 = vmatpush3.bf16.msra.mxu1 %v1684_v5 }
  0x99   :  { %1441 = vmatprep.subr.bf16.mxu1 %v1685_v6 }
  0x9a   :  { %803 = vmatpush1.bf16.msra.mxu0 %v1616_v37 }
  0x9b   :  { %804 = vmatprep.subr.bf16.mxu0 %v1624_v38  ;;  %v1687_v38 = vld [vmem:[%s1987_s5] sm:$0xff]  }
  0x9c   :  { %1442 = vmatpush3.bf16.msra.mxu1 %v1686_v7 }
  0x9d   :  { %1463 = vmatprep.subr.bf16.mxu1 %v1811_v8 }
  0x9e   :  { %805 = vmatpush1.bf16.msra.mxu0 %v1622_v41  ;;  %v1690_v41 = vld [vmem:[%s1987_s5 + $0x18] sm:$0xff]  }
  0x9f   :  { %806 = vmatprep.subr.bf16.mxu0 %v1630_v42  ;;  %v1691_v42 = vld [vmem:[%s1987_s5 + $0x20] sm:$0xff]  }
  0xa2   :  { %807 = vmatpush1.bf16.msra.mxu0 %v1628_v45  ;;  %v1694_v45 = vld [vmem:[%s1987_s5 + $0x38] sm:$0xff]  }
  0xa3   :  { %808 = vmatprep.subr.bf16.mxu0 %v1636_v46 }
  0xa6   :  { %809 = vmatpush1.bf16.msra.mxu0 %v1634_v47  ;;  %v1395_v47 = vld [vmem:[%s1986_s4] ss:$0 sm:$0xff] }
  0xa7   :  { %810 = vmatprep.subr.bf16.mxu0 %v1642_v48 }
  0xaa   :  { %811 = vmatpush1.bf16.msra.mxu0 %v1640_v49 }
  0xab   :  { %812 = vmatprep.subr.bf16.mxu0 %v1648_v50 }
  0xae   :  { %813 = vmatpush1.bf16.msra.mxu0 %v1646_v51 }
  0xaf   :  { %814 = vmatprep.subr.bf16.mxu0 %v1654_v52 }
  0xb2   :  { %815 = vmatpush1.bf16.msra.mxu0 %v1652_v53 }
  0xb3   :  { %816 = vmatprep.subr.bf16.mxu0 %v1660_v54 }
  0xb6   :  { %817 = vmatpush1.bf16.msra.mxu0 %v1658_v55 }
  0xb7   :  { %829 = vmatprep.subr.bf16.mxu0 %v1666_v58 }
  0xb9   :  { %819 = vmatmul.mubr.bf16.vlgmr.msra.gmra.mrb[0].mxu0 %v93_v59  ;;  %v1696_v59 = vld [vmem:[%s1989_s7 + $0x8] sm:$0xff]  }
  0xba   :  { %830 = vmatpush1.bf16.msra.mxu0 %v1664_v60  ;;  %861 = vmatprep.mubr.bf16.mxu0 %v1810_v61  ;;  %v1697_v60 = vld [vmem:[%s1989_s7 + $0x10] sm:$0xff]   ;;  %v1698_v61 = vld [vmem:[%s1989_s7 + $0x18] sm:$0xff]   ;;  %s1283_s7 = sshll.u32 %s1813_s6, 4  ;;  %s1284_s7 = int_to_ptr.vmem [resolvable:$true] %s1283_s7 }
  0xbb   :  { %p1778_p11 = scmp.lt.s32.totalorder %s1284_s7, %s1284_s7 }
  0xc5   :  { %1394 = vmatmul.mubr.msk.bf16.vlgmr.msra.gmra.mrb[0].mxu0 %vm696_vm0, %v95_v0 }
 0x152   :  { %v734_v9 = vpop.f32.mrb[0].mxu1 }
 0x153   :  { %v736_v10 = vpop.f32.mrb[1].mxu1  ;;  %v735_v20 = vadd.f32 %v734_v9, %v199_v18 }
 0x154   :  { %v738_v11 = vpop.f32.mrb[2].mxu1  ;;  %v737_v21 = vadd.f32 %v736_v10, %v203_v19 }
 0x155   :  { %v740_v12 = vpop.f32.mrb[3].mxu1  ;;  %v739_v23 = vadd.f32 %v738_v11, %v199_v18 }
 0x156   :  { %v741_v26 = vadd.f32 %v740_v12, %v203_v19 }
 0x198   :  { %v863_v22 = vpop.f32.mrb[0].mxu0 }
 0x199   :  { %v1496_v24 = vadd.f32 %v863_v22, %v735_v20  ;;  %v865_v25 = vpop.f32.mrb[1].mxu0 }
 0x19a   :  { %v1498_v27 = vadd.f32 %v865_v25, %v737_v21  ;;  %v867_v28 = vpop.f32.mrb[2].mxu0 }
 0x19b   :  { %v1500_v29 = vadd.f32 %v867_v28, %v739_v23  ;;  %v869_v30 = vpop.f32.mrb[3].mxu0  ;;  %v872_v32 = vmax.f32 %v1496_v24, 0.0 }
 0x19c   :  { %v1502_v31 = vadd.f32 %v869_v30, %v741_v26  ;;  %v873_v34 = vmax.f32 %v1498_v27, 0.0 }
 0x19d   :  { %v874_v33 = vmax.f32 %v1500_v29, 0.0 }
 0x19e   :  { %v875_v35 = vmax.f32 %v1502_v31, 0.0 }
 0x19f   :  { %v876_v36 = vpack.c.bf16 %v874_v33, %v872_v32 }
 0x1a0   :  { %v877_v37 = vpack.c.bf16 %v875_v35, %v873_v34 }
 0x1a2   :  { %1045 = vmatprep.mubr.bf16.mxu1 %v877_v37 }
 0x1a3   :  { %1046 = vmatmul.mubr.bf16.vlgmr.msra.gmra.mrb[4].mxu1 %v876_v36 }
 0x1a4   :  { %1464 = vmatpush3.bf16.msra.mxu1 %v1687_v38  ;;  %1479 = vmatprep.mubr.msk.bf16.mxu1 %vm1812_vm1, %v1811_v8 }
 0x1a5   :  { %1465 = vmatprep.subr.bf16.mxu1 %v1811_v8 }
 0x1a8   :  { %1466 = vmatpush3.bf16.msra.mxu1 %v1688_v39 }
 0x1a9   :  { %1467 = vmatprep.subr.bf16.mxu1 %v1811_v8 }
 0x1ac   :  { %1468 = vmatpush3.bf16.msra.mxu1 %v1689_v40 }
 0x1ad   :  { %1469 = vmatprep.subr.bf16.mxu1 %v1811_v8 }
 0x1b0   :  { %1470 = vmatpush3.bf16.msra.mxu1 %v1690_v41 }
 0x1b1   :  { %1471 = vmatprep.subr.bf16.mxu1 %v1811_v8 }
 0x1b4   :  { %1472 = vmatpush3.bf16.msra.mxu1 %v1691_v42 }
 0x1b5   :  { %1473 = vmatprep.subr.bf16.mxu1 %v1811_v8 }
 0x1b8   :  { %1474 = vmatpush3.bf16.msra.mxu1 %v1692_v43 }
 0x1b9   :  { %1475 = vmatprep.subr.bf16.mxu1 %v1811_v8 }
 0x1bc   :  { %1476 = vmatpush3.bf16.msra.mxu1 %v1693_v44 }
 0x1bd   :  { %1477 = vmatprep.subr.bf16.mxu1 %v1811_v8 }
 0x1c0   :  { %1478 = vmatpush3.bf16.msra.mxu1 %v1694_v45 }
 0x1c1   :  { %1483 = vmatprep.subr.bf16.mxu1 %v1811_v8 }
 0x276   :  { %v1443_v46 = vpop.f32.mrb[4].mxu1 }
 0x277   :  { %v1444_v48 = vpop.f32.mrb[5].mxu1 }
 0x278   :  { %v1445_v49 = vadd.f32 %v1444_v48, %v1443_v46  ;;  %v1446_v50 = vpop.f32.mrb[6].mxu1 }
 0x279   :  { %v1447_v51 = vpop.f32.mrb[7].mxu1 }
 0x27a   :  { %v1048_v52 = vadd.f32 %v1445_v49, %v1395_v47  ;;  %v1448_v53 = vadd.f32 %v1447_v51, %v1446_v50 }
 0x27c   :  { %v1051_v54 = vadd.f32 %v1448_v53, %v1395_v47  ;;  %v1054_v55 = vmax.f32 %v1048_v52, 0.0 }
 0x27e   :  { %v1055_v56 = vmax.f32 %v1051_v54, 0.0 }
 0x280   :  { %v1056_v58 = vpack.c.bf16 %v1055_v56, %v1054_v55 }
 0x282   :  { %1480 = vmatmul.mubr.bf16.vlgmr.msra.gmra.mrb[8].mxu1 %v1056_v58 }
 0x283   :  { %1484 = vmatpush3.bf16.msra.mxu1 %v1695_v57  ;;  %1491 = vmatprep.mubr.msk.bf16.mxu1 %vm1812_vm1, %v1811_v8 }
 0x284   :  { %1485 = vmatprep.subr.bf16.mxu1 %v1811_v8 }
 0x287   :  { %1486 = vmatpush3.bf16.msra.mxu1 %v1696_v59 }
 0x288   :  { %1487 = vmatprep.subr.bf16.mxu1 %v1811_v8 }
 0x28b   :  { %1488 = vmatpush3.bf16.msra.mxu1 %v1697_v60 }
 0x28c   :  { %1489 = vmatprep.subr.bf16.mxu1 %v1811_v8  ;;  %v1421_v8 = vld [vmem:[%s1990_s8] ss:$0 sm:$0xff]  ;;  %s1773_s8 = scalar_lea.vmem %s1284_s7, 256 }
 0x28d   :  { %p1774_p10 = scmp.ne.s32.totalorder %s1284_s7, %s1773_s8  ;;  %p1779_p12 = scmp.lt.s32.totalorder %s1773_s8, %s1773_s8 }
 0x28f   :  { %1490 = vmatpush3.bf16.msra.mxu1 %v1698_v61  ;;  %p1780_p13 = por %p1779_p12, %p1778_p11 }
 0x291   :  { %p1781_p0 = pnand %p1780_p13, %p1774_p10 }
 0x355   :  { %v1162_v63 = vpop.f32.mrb[8].mxu1 }
 0x356   :  { %v1163_v0 = vadd.f32 %v1412_v62, %v1162_v63  ;;  %v1481_v1 = vpop.f32.mrb[9].mxu1 }
 0x357   :  { %v1165_v2 = vpop.f32.mrb[10].mxu1 }
 0x358   :  { %v1166_v3 = vadd.f32 %v1412_v62, %v1165_v2  ;;  %v1482_v4 = vpop.f32.mrb[11].mxu1  ;;  %v1169_v5 = vmax.f32 %v1163_v0, 0.0 }
 0x35a   :  { %v1170_v6 = vmax.f32 %v1166_v3, 0.0 }
 0x35c   :  { %v1171_v7 = vpack.c.bf16 %v1170_v6, %v1169_v5 }
 0x35e   :  { %1492 = vmatmul.mubr.msk.bf16.vlgmr.msra.gmra.mrb[12].mxu1 %vm1211_vm2, %v1171_v7 }
 0x431   :  { %v1249_v9 = vpop.f32.mrb[12].mxu1 }
 0x432   :  { %v1250_v10 = vadd.f32 %v1421_v8, %v1249_v9  ;;  %v1493_v11 = vpop.f32.mrb[13].mxu1 }
 0x433   :  { %v1252_v12 = vpop.f32.mrb[14].mxu1 }
 0x434   :  { %1256 = vmax.xlane.f32.xlu0 %v1250_v10  ;;  %v1494_v13 = vpop.f32.mrb[15].mxu1  ;;  %v1253_v14 = vadd.f32 %v1421_v8, %v1252_v12 }
 0x438   :  { %1258 = vmax.xlane.f32.xlu0 %v1253_v14 }
 0x4c1   :  { %v1257_v15 = vpop.xlane.xlu0 %1256 }
 0x4c2   :  { %v1260_v16 = vsub.f32 %v1250_v10, %v1257_v15 }
 0x4c4   :  { %v1262_v17 = vmul.f32 1.442695, %v1260_v16 }
 0x4c5   :  { %v1259_v18 = vpop.xlane.xlu0 %1258 }
 0x4c6   :  { %v1261_v19 = vsub.f32 %v1253_v14, %v1259_v18  ;;  %1699 = vpow2.f32 %v1262_v17 }
 0x4c8   :  { %v1264_v20 = vmul.f32 1.442695, %v1261_v19 }
 0x4ca   :  { %1701 = vpow2.f32 %v1264_v20 }
 0x4d0   :  { %v1700_v21 = vpop.eup %1699 }
 0x4d1   :  { %1266 = vadd.xlane.f32.xlu1 %v1700_v21 }
 0x4d4   :  { %v1702_v22 = vpop.eup %1701 }
 0x4d5   :  { %1268 = vadd.xlane.f32.xlu1 %v1702_v22 }
 0x55e   :  { %v1267_v23 = vpop.xlane.xlu1 %1266 }
 0x55f   :  { %1703 = vlog2.f32 %v1267_v23 }
 0x562   :  { %v1269_v24 = vpop.xlane.xlu1 %1268 }
 0x563   :  { %1705 = vlog2.f32 %v1269_v24 }
 0x569   :  { %v1704_v25 = vpop.eup %1703 }
 0x56a   :  { %v1271_v26 = vmul.f32 0.6931472, %v1704_v25 }
 0x56c   :  { %v1274_v27 = vsub.f32 %v1260_v16, %v1271_v26 }
 0x56d   :  { %v1706_v28 = vpop.eup %1705 }
 0x56e   :  { %1276 = vst [vmem:[#allocation8] sm:$0xff] %v1274_v27  ;;  %v1273_v29 = vmul.f32 0.6931472, %v1706_v28 }
 0x570   :  { %v1275_v30 = vsub.f32 %v1261_v19, %v1273_v29 }
 0x572   :  { %1277 = vst [vmem:[#allocation8 + $0x8] sm:$0xff] %v1275_v30 }
 0x573   :  { %1784 = shalt.err (!%p1781_p0)
}
 0x574   :  { %s1785_s15 = scalar_lea.hbm %s1991_s9, 256 }
 0x575   :  { %p1786_p1 = scmp.ne.s32.totalorder %s1991_s9, %s1785_s15  ;;  %p1789_p2 = scmp.lt.u32.totalorder %s1785_s15, %s1991_s9 }
 0x577   :  { %p1791_p3 = pnand %p1789_p2, %p1786_p1 }
 0x579   :  { %1794 = shalt.err (!%p1791_p3)
}
 0x57a   :  { %1289 = dma.vmem_to_hbm [thread:$0]  %s1284_s7, 256, %s1991_s9, [#allocation4], %s1802_s19, %s1802_s19, %s1803_s20  }
 0x57b   :  { %1799 = dma.done.wait [#allocation4], 256  }
 0x57c   :  { %1800 = vsyncadd [#allocation4], 4294967040 }
 0x57d   :  { %1293 = vsyncpa [#allocation3], 1 }
 0x57e   :  { %1294 = vsyncpa [#allocation6], 1 }
 0x57f   :  { %1295 = vsyncpa [#allocation4], 1 }

</bundles_post_ra>
